<compile_context>
chip_gen: v5e
topology: v5e:2x2
jax: 0.10.0
libtpu: 0.0.40
codegen_flags: <defaults>
</compile_context>

<pallas_src>
import functools

import jax
import jax.numpy as jnp
from jax import lax
from jax.experimental import pallas as pl
from jax.experimental.pallas import tpu as pltpu

_LANES = 128
_SUBLANES = 8


def _elementwise_loss(sim, lab, margin):
    """(1-lab)*sim^2 + lab*max(margin-sim,0)^2, rewritten with one fewer VPU op."""
    sim = sim.astype(jnp.float32)
    lab = lab.astype(jnp.float32)
    s2 = sim * sim
    t = jnp.maximum(margin - sim, 0.0)
    return s2 + lab * (t * t - s2)


def _contrastive_loss_kernel(sim_ref, lab_ref, acc_ref, *, margin, rows,
                             tile_rows, tiles_per_shard, mask_needed):
    c = pl.program_id(0)  # shard axis ("parallel")
    i = pl.program_id(1)  # reduction axis ("arbitrary")

    @pl.when(i == 0)
    def _():
        acc_ref[...] = jnp.zeros_like(acc_ref)

    loss = _elementwise_loss(sim_ref[...], lab_ref[...], margin)

    def _accumulate(x):
        # (tile_rows, 128) -> (tile_rows//8, 8, 128) -> sum over the leading
        # axis: tile-aligned reshape + pure vreg-to-vreg VPU adds.  The final
        # cross-lane reduce is deferred to XLA, outside the hot loop.
        acc_ref[...] += x.reshape(-1, _SUBLANES, _LANES).sum(axis=0)[None, :, :]

    if mask_needed:
        # Logical (unclamped) position of this tile.  Tiles whose logical rows
        # reach past `rows` read unspecified data (the index_map clamps the DMA
        # window so it always starts in bounds); their contribution is masked
        # to exactly zero here.  `rows` is a compile-time Python int.
        row_start = (c * tiles_per_shard + i) * tile_rows
        is_full = row_start + tile_rows <= rows

        @pl.when(is_full)
        def _():
            _accumulate(loss)

        @pl.when(jnp.logical_not(is_full))
        def _():
            rid = row_start + lax.broadcasted_iota(jnp.int32, loss.shape, 0)
            _accumulate(jnp.where(rid < rows, loss, 0.0))
    else:
        _accumulate(loss)


def contrastive_loss(similarity, labels, margin=1.0, *, tile_rows=4096, num_shards=1):
    """Pallas TPU implementation of ContrastiveLoss.forward (returns scalar f32).

    Tuning notes:
      * bf16 `similarity`/`labels` are accepted and halve HBM traffic (kernel
        upcasts internally); do not pre-cast in the wrapper.
      * v5e / v6e (single TensorCore): keep the defaults.  Do not raise
        tile_rows past ~4096 on v5e without also raising vmem_limit_bytes.
      * v7x: pass num_shards=2 (one shard per TensorCore) and tile_rows=8192.
        # TODO(synk): verify in a profile that the leading "parallel" axis is
        # actually split across both v7x TensorCores; otherwise switch it to
        # pltpu.CORE_PARALLEL.
    """
    assert similarity.shape == labels.shape
    total = similarity.size
    assert total > 0
    margin = float(margin)

    sim_flat = jnp.ravel(similarity)
    lab_flat = jnp.ravel(labels)

    rows, lane_tail = divmod(total, _LANES)

    if rows < _SUBLANES:
        # Below one (8, 128) tile: kernel/grid overhead dominates -> plain XLA.
        return jnp.sum(_elementwise_loss(sim_flat, lab_flat, margin)) / total

    tail_sum = jnp.float32(0.0)
    if lane_tail:
        # Ragged lane tail (< 128 elements): computed in plain XLA; the kernel
        # runs on the 128-aligned bulk.  Only this rare misaligned case pays
        # for materializing the bulk prefix; 128-aligned inputs reach the
        # kernel via a zero-copy reshape (no jnp.pad pass anywhere).
        bulk = rows * _LANES
        tail_sum = jnp.sum(
            _elementwise_loss(sim_flat[bulk:], lab_flat[bulk:], margin))
        sim_flat = sim_flat[:bulk]
        lab_flat = lab_flat[:bulk]

    sim2 = sim_flat.reshape(rows, _LANES)
    lab2 = lab_flat.reshape(rows, _LANES)

    # Row tile: a multiple of 8 sublanes, no larger than the row count.
    tr = (min(int(tile_rows), rows) // _SUBLANES) * _SUBLANES
    num_tiles = pl.cdiv(rows, tr)
    num_shards = max(1, min(int(num_shards), num_tiles))
    tiles_per_shard = pl.cdiv(num_tiles, num_shards)
    # Masking code is only emitted if some grid tile can reach past `rows`.
    mask_needed = (num_tiles * tr != rows) or (num_shards * tiles_per_shard != num_tiles)
    last_tile = num_tiles - 1

    def in_index_map(c, i):
        # Clamp so the DMA window always starts in bounds; logically-OOB tiles
        # are zeroed out by the in-kernel mask.
        return (jnp.minimum(c * tiles_per_shard + i, last_tile), 0)

    kernel = functools.partial(
        _contrastive_loss_kernel, margin=margin, rows=rows, tile_rows=tr,
        tiles_per_shard=tiles_per_shard, mask_needed=mask_needed)

    partials = pl.pallas_call(
        kernel,
        out_shape=jax.ShapeDtypeStruct((num_shards, _SUBLANES, _LANES), jnp.float32),
        grid_spec=pltpu.PrefetchScalarGridSpec(
            num_scalar_prefetch=0,
            grid=(num_shards, tiles_per_shard),
            in_specs=[
                pl.BlockSpec((tr, _LANES), in_index_map),
                pl.BlockSpec((tr, _LANES), in_index_map),
            ],
            # Per-shard accumulator: same block across the reduction axis.
            out_specs=pl.BlockSpec((1, _SUBLANES, _LANES), lambda c, i: (c, 0, 0)),
        ),
        compiler_params=pltpu.CompilerParams(
            dimension_semantics=("parallel", "arbitrary"),
        ),
    )(sim2, lab2)

    # Tiny final cross-lane reduce + mean, done once in XLA.
    return (jnp.sum(partials) + tail_sum) / total


def _reference(similarity, labels, margin=1.0):
    sim = similarity.astype(jnp.float32)
    lab = labels.astype(jnp.float32)
    pos = (1.0 - lab) * sim**2
    neg = lab * jnp.maximum(margin - sim, 0.0) ** 2
    return jnp.mean(pos + neg)


if __name__ == "__main__":
    key = jax.random.PRNGKey(0)
    k1, k2, k3, k4, k5, k6 = jax.random.split(key, 6)

    # Case 1: lane-aligned 2-D input (zero-copy fast path, no in-kernel mask).
    sim1 = jax.random.uniform(k1, (16, 128), jnp.float32, minval=-1.0, maxval=1.0)
    lab1 = jax.random.bernoulli(k2, 0.5, (16, 128)).astype(jnp.float32)
    out1 = jax.block_until_ready(contrastive_loss(sim1, lab1, margin=1.0))
    ref1 = _reference(sim1, lab1, margin=1.0)
    assert jnp.allclose(out1, ref1, rtol=1e-5, atol=1e-6), (out1, ref1)

    # Case 2: awkward 3-D shape — ragged rows (in-kernel mask) + lane tail in XLA.
    shp = (7, 13, 129)  # 11739 elements = 91 lane-rows of 128 + 91-element tail
    sim2 = jax.random.uniform(k3, shp, jnp.float32, minval=-2.0, maxval=2.0)
    lab2 = jax.random.bernoulli(k4, 0.5, shp).astype(jnp.float32)
    ref2 = _reference(sim2, lab2, margin=1.0)
    out2a = jax.block_until_ready(contrastive_loss(sim2, lab2, margin=1.0))
    assert jnp.allclose(out2a, ref2, rtol=1e-5, atol=1e-6), (out2a, ref2)
    # Same data with 2 shards + small tiles: exercises the uneven-shard /
    # fully-out-of-bounds-tile clamp-and-mask path (v7x-style config).
    out2b = jax.block_until_ready(
        contrastive_loss(sim2, lab2, margin=1.0, tile_rows=32, num_shards=2))
    assert jnp.allclose(out2b, ref2, rtol=1e-5, atol=1e-6), (out2b, ref2)

    # Case 3: bf16 inputs (halved HBM traffic; kernel upcasts internally).
    sim3 = jax.random.uniform(
        k5, (64, 256), jnp.float32, minval=-1.5, maxval=1.5).astype(jnp.bfloat16)
    lab3 = jax.random.bernoulli(k6, 0.5, (64, 256)).astype(jnp.bfloat16)
    out3 = jax.block_until_ready(contrastive_loss(sim3, lab3, margin=1.0))
    ref3 = _reference(sim3, lab3, margin=1.0)
    assert jnp.allclose(out3, ref3, rtol=1e-4, atol=1e-5), (out3, ref3)

    # Case 4: tiny input (< one (8,128) tile) -> pure-XLA fallback path.
    sim4 = jax.random.uniform(k1, (3, 5, 7), jnp.float32, minval=-1.0, maxval=1.0)
    lab4 = jax.random.bernoulli(k2, 0.5, (3, 5, 7)).astype(jnp.float32)
    out4 = jax.block_until_ready(contrastive_loss(sim4, lab4, margin=1.0))
    ref4 = _reference(sim4, lab4, margin=1.0)
    assert jnp.allclose(out4, ref4, rtol=1e-5, atol=1e-6), (out4, ref4)

    print("KERNEL_OK")
</pallas_src>

<mosaic_0001>
module attributes {stable_mosaic.version = 11 : i64} {
  func.func @_contrastive_loss_kernel(%arg0: i32, %arg1: i32, %arg2: memref<16x128xf32, #tpu.memory_space<vmem>>, %arg3: memref<16x128xf32, #tpu.memory_space<vmem>>, %arg4: memref<1x8x128xf32, #tpu.memory_space<vmem>>) attributes {dimension_semantics = [#tpu.dimension_semantics<parallel>, #tpu.dimension_semantics<arbitrary>], iteration_bounds = array<i64: 1, 1>, scalar_prefetch = 0 : i64, scratch_operands = 0 : i64, tpu.core_type = #tpu.core_type<tc>, window_params = [{transform_indices = @transform_0, window_bounds = array<i64: 16, 128>}, {transform_indices = @transform_1, window_bounds = array<i64: 16, 128>}, {transform_indices = @transform_2, window_bounds = array<i64: 1, 8, 128>}]} {
    %c0_i32 = arith.constant 0 : i32
    %0 = arith.cmpi eq, %arg1, %c0_i32 : i32
    %1 = arith.extui %0 : i1 to i32
    %c0_i32_0 = arith.constant 0 : i32
    %2 = arith.cmpi ne, %1, %c0_i32_0 : i32
    scf.if %2 {
      %cst_12 = arith.constant 0.000000e+00 : f32
      %20 = vector.broadcast %cst_12 : f32 to vector<1x8x128xf32>
      %c0_13 = arith.constant 0 : index
      %c0_14 = arith.constant 0 : index
      %c0_15 = arith.constant 0 : index
      %21 = vector.load %arg4[%c0_13, %c0_14, %c0_15] : memref<1x8x128xf32, #tpu.memory_space<vmem>>, vector<1x8x128xf32>
      tpu.vector_store %arg4[%c0_13, %c0_14, %c0_15], %20 {strides = array<i32>} : memref<1x8x128xf32, #tpu.memory_space<vmem>>, vector<1x8x128xf32>,
    } else {
    }
    %c0 = arith.constant 0 : index
    %c0_1 = arith.constant 0 : index
    %3 = vector.load %arg2[%c0, %c0_1] : memref<16x128xf32, #tpu.memory_space<vmem>>, vector<16x128xf32>
    %c0_2 = arith.constant 0 : index
    %c0_3 = arith.constant 0 : index
    %4 = vector.load %arg3[%c0_2, %c0_3] : memref<16x128xf32, #tpu.memory_space<vmem>>, vector<16x128xf32>
    %5 = arith.mulf %3, %3 : vector<16x128xf32>
    %cst = arith.constant 1.000000e+00 : f32
    %6 = vector.broadcast %cst : f32 to vector<16x128xf32>
    %7 = arith.subf %6, %3 : vector<16x128xf32>
    %cst_4 = arith.constant 0.000000e+00 : f32
    %8 = vector.broadcast %cst_4 : f32 to vector<16x128xf32>
    %9 = arith.maximumf %7, %8 : vector<16x128xf32>
    %10 = arith.mulf %9, %9 : vector<16x128xf32>
    %11 = arith.subf %10, %5 : vector<16x128xf32>
    %12 = arith.mulf %4, %11 : vector<16x128xf32>
    %13 = arith.addf %5, %12 : vector<16x128xf32>
    %c0_5 = arith.constant 0 : index
    %c0_6 = arith.constant 0 : index
    %c0_7 = arith.constant 0 : index
    %14 = vector.load %arg4[%c0_5, %c0_6, %c0_7] : memref<1x8x128xf32, #tpu.memory_space<vmem>>, vector<1x8x128xf32>
    %15 = vector.shape_cast %13 : vector<16x128xf32> to vector<2x8x128xf32>
    %cst_8 = arith.constant dense<0.000000e+00> : vector<8x128xf32>
    %16 = vector.multi_reduction <add>, %15, %cst_8 [0] : vector<2x8x128xf32> to vector<8x128xf32>
    %17 = vector.shape_cast %16 : vector<8x128xf32> to vector<1x8x128xf32>
    %18 = arith.addf %14, %17 : vector<1x8x128xf32>
    %c0_9 = arith.constant 0 : index
    %c0_10 = arith.constant 0 : index
    %c0_11 = arith.constant 0 : index
    %19 = vector.load %arg4[%c0_9, %c0_10, %c0_11] : memref<1x8x128xf32, #tpu.memory_space<vmem>>, vector<1x8x128xf32>
    tpu.vector_store %arg4[%c0_9, %c0_10, %c0_11], %18 {strides = array<i32>} : memref<1x8x128xf32, #tpu.memory_space<vmem>>, vector<1x8x128xf32>,
    return
  }
  func.func @transform_0(%arg0: i32, %arg1: i32) -> (i32, i32) {
    %c1_i32 = arith.constant 1 : i32
    %0 = arith.muli %arg0, %c1_i32 : i32
    %1 = arith.addi %0, %arg1 : i32
    %c0_i32 = arith.constant 0 : i32
    %2 = arith.minsi %1, %c0_i32 : i32
    %c0_i32_0 = arith.constant 0 : i32
    %c0_i32_1 = arith.constant 0 : i32
    return %2, %c0_i32_0 : i32, i32
  }
  func.func @transform_1(%arg0: i32, %arg1: i32) -> (i32, i32) {
    %c1_i32 = arith.constant 1 : i32
    %0 = arith.muli %arg0, %c1_i32 : i32
    %1 = arith.addi %0, %arg1 : i32
    %c0_i32 = arith.constant 0 : i32
    %2 = arith.minsi %1, %c0_i32 : i32
    %c0_i32_0 = arith.constant 0 : i32
    %c0_i32_1 = arith.constant 0 : i32
    return %2, %c0_i32_0 : i32, i32
  }
  func.func @transform_2(%arg0: i32, %arg1: i32) -> (i32, i32, i32) {
    %c0_i32 = arith.constant 0 : i32
    %c0_i32_0 = arith.constant 0 : i32
    %c0_i32_1 = arith.constant 0 : i32
    return %arg0, %c0_i32, %c0_i32_0 : i32, i32, i32
  }
}

</mosaic_0001>

<bundles_post_ra>
// kernel: tpu_custom_call.1
= control target key start
LH: loop header
LB: loop body
LE: loop exit
PB: predicated region body
PF: predicated region fallthrough
CT: control target
= control target key end

     0   :  { %7 = vsyncpa [#allocation3], 0  ;;  %s226_s0 = inlined_call_operand.hbm [shape: f32[16,128], index: 0, kind: input, shape index: {}]   ;;  %s227_s1 = inlined_call_operand.hbm [shape: f32[16,128], index: 1, kind: input, shape index: {}]   ;;  %s228_s2 = inlined_call_operand.hbm [shape: f32[1,8,128], index: 2, kind: output, shape index: {}]  }
   0x1   :  { %8 = vsyncpa [#allocation6], 0 }
   0x2   :  { %9 = vsyncpa [#allocation4], 0  ;;  %s20_s11 = sshll.u32 %s226_s0, 4  ;;  %s197_s12 = smov [#allocation2]   ;;  %s21_s11 = int_to_ptr.hbm [resolvable:$true] %s20_s11 }
   0x3   :  { %s22_s13 = sshll.u32 %s197_s12, 4  ;;  %s39_s16 = sshll.u32 %s227_s1, 4  ;;  %s23_s13 = int_to_ptr.vmem [resolvable:$true] %s22_s13  ;;  %s40_s16 = int_to_ptr.hbm [resolvable:$true] %s39_s16 }
   0x4   :  { %s198_s17 = smov 128   ;;  %s199_s18 = smov 8  }
   0x5   :  { %28 = dma.hbm_to_vmem [thread:$0]  %s21_s11, 256, %s23_s13, [#allocation3], %s198_s17, %s198_s17, %s199_s18  }
   0x6   :  { %s200_s19 = smov [#allocation5]  }
   0x7   :  { %s41_s20 = sshll.u32 %s200_s19, 4  ;;  %s42_s20 = int_to_ptr.vmem [resolvable:$true] %s41_s20 }
   0x8   :  { %47 = dma.hbm_to_vmem [thread:$0]  %s40_s16, 256, %s42_s20, [#allocation6], %s198_s17, %s198_s17, %s199_s18  }
   0x9   :  { %191 = dma.done.wait [#allocation3], 256  }
   0xa   :  { %192 = vsyncadd [#allocation3], 4294967040 }
   0xb   :  { %193 = dma.done.wait [#allocation6], 256  }
   0xc   :  { %194 = vsyncadd [#allocation6], 4294967040  ;;  %v69_v0 = vld [vmem:[#allocation2] sm:$0xff]  ;;  %v70_v1 = vld [vmem:[#allocation2 + $0x8] sm:$0xff]  ;;  %s201_s0 = smov [#allocation7]   ;;  %s98_s23 = sshll.u32 %s228_s2, 4  ;;  %s99_s23 = int_to_ptr.hbm [resolvable:$true] %s98_s23 }
   0xd   :  { %v75_v2 = vsub.f32 1.0, %v69_v0  ;;  %v76_v3 = vsub.f32 1.0, %v70_v1  ;;  %v73_v4 = vmul.f32 %v69_v0, %v69_v0  ;;  %v74_v5 = vmul.f32 %v70_v1, %v70_v1  ;;  %v71_v10 = vld [vmem:[#allocation5] sm:$0xff]  ;;  %v72_v11 = vld [vmem:[#allocation5 + $0x8] sm:$0xff]  ;;  %s96_s1 = sshll.u32 %s201_s0, 4  ;;  %s97_s1 = int_to_ptr.vmem [resolvable:$true] %s96_s1 }
   0xf   :  { %v77_v6 = vmax.f32 %v75_v2, 0.0  ;;  %v78_v7 = vmax.f32 %v76_v3, 0.0 }
  0x11   :  { %v79_v8 = vmul.f32 %v77_v6, %v77_v6  ;;  %v80_v9 = vmul.f32 %v78_v7, %v78_v7 }
  0x13   :  { %v81_v12 = vsub.f32 %v79_v8, %v73_v4  ;;  %v82_v13 = vsub.f32 %v80_v9, %v74_v5 }
  0x15   :  { %v83_v14 = vmul.f32 %v81_v12, %v71_v10  ;;  %v84_v15 = vmul.f32 %v82_v13, %v72_v11 }
  0x17   :  { %v85_v16 = vadd.f32 %v83_v14, %v73_v4  ;;  %v86_v17 = vadd.f32 %v84_v15, %v74_v5 }
  0x19   :  { %v88_v18 = vadd.f32 %v86_v17, %v85_v16 }
  0x1b   :  { %90 = vst [vmem:[#allocation7] sm:$0xff] %v88_v18 }
  0x1c   :  { %101 = dma.vmem_to_hbm [thread:$0]  %s97_s1, 128, %s99_s23, [#allocation4]  }
  0x1d   :  { %195 = dma.done.wait [#allocation4], 128  }
  0x1e   :  { %196 = vsyncadd [#allocation4], 4294967168 }
  0x1f   :  { %106 = vsyncpa [#allocation3], 1 }
  0x20   :  { %107 = vsyncpa [#allocation6], 1 }
  0x21   :  { %108 = vsyncpa [#allocation4], 1 }

</bundles_post_ra>
